<compile_context>
chip_gen: v7x
topology: tpu7x:2x2x1
jax: 0.10.0
libtpu: 0.0.40
codegen_flags: <defaults>
</compile_context>

<pallas_src>
import jax
import jax.numpy as jnp
from jax.experimental import pallas as pl
from jax.experimental.pallas import tpu as pltpu


def linear_sigmoid_kernel(x_ref, wb_ref, o_ref):
    # x_ref: (N, IN); wb_ref: (IN+1, OUT) with rows [0:IN] = W^T, row IN = bias
    x = x_ref[...]
    wb = wb_ref[...]
    w_t = wb[:-1, :]   # (IN, OUT)  -- static slice on the loaded tile
    b = wb[-1:, :]     # (1, OUT)
    # Single MXU matmul with f32 accumulation; no transpose inside the kernel.
    z = jnp.dot(x, w_t, preferred_element_type=jnp.float32) + b
    # True logistic lowering -> EUP slot (not a VALU divide).
    o_ref[...] = jax.nn.sigmoid(z).astype(o_ref.dtype)


def model1_forward(x, weight, bias):
    """x: (N, IN); weight: (OUT, IN) (PyTorch nn.Linear layout); bias: (OUT,)."""
    N, IN = x.shape
    OUT = weight.shape[0]
    # Layout plumbing in the wrapper: transpose W and fold the bias in as the
    # last row, so the kernel gets exactly two inputs.
    wb = jnp.concatenate([weight.T, bias.reshape(1, OUT)], axis=0)  # (IN+1, OUT)

    vmem_spec = pl.BlockSpec(memory_space=pltpu.MemorySpace.VMEM)
    return pl.pallas_call(
        linear_sigmoid_kernel,
        out_shape=jax.ShapeDtypeStruct((N, OUT), x.dtype),
        in_specs=[vmem_spec, vmem_spec],
        out_specs=vmem_spec,
    )(x, wb)


if __name__ == "__main__":
    key = jax.random.PRNGKey(0)
    kx, kw, kb = jax.random.split(key, 3)

    IN_FEATURES, OUT_FEATURES, BATCH = 10, 2, 3

    # Deterministic parameter init (mimics nn.Linear uniform(-1/sqrt(in), 1/sqrt(in)))
    bound = 1.0 / (IN_FEATURES ** 0.5)
    weight = jax.random.uniform(
        kw, (OUT_FEATURES, IN_FEATURES), jnp.float32, -bound, bound
    )
    bias = jax.random.uniform(kb, (OUT_FEATURES,), jnp.float32, -bound, bound)

    x = jax.random.normal(kx, (BATCH, IN_FEATURES), jnp.float32)

    y = model1_forward(x, weight, bias)
    jax.block_until_ready(y)

    # Reference check in plain JAX
    y_ref = jax.nn.sigmoid(x @ weight.T + bias)
    assert y.shape == (BATCH, OUT_FEATURES)
    assert jnp.allclose(y, y_ref, atol=1e-5), "mismatch vs reference"

    print("KERNEL_OK")
</pallas_src>

<mosaic_0001>
module attributes {stable_mosaic.version = 11 : i64} {
  func.func @linear_sigmoid_kernel(%arg0: memref<3x10xf32, #tpu.memory_space<vmem>>, %arg1: memref<11x2xf32, #tpu.memory_space<vmem>>, %arg2: memref<3x2xf32, #tpu.memory_space<vmem>>) attributes {dimension_semantics = [], scalar_prefetch = 0 : i64, scratch_operands = 0 : i64, tpu.core_type = #tpu.core_type<tc>} {
    %c0 = arith.constant 0 : index
    %c0_0 = arith.constant 0 : index
    %0 = vector.load %arg0[%c0, %c0_0] : memref<3x10xf32, #tpu.memory_space<vmem>>, vector<3x10xf32>
    %c0_1 = arith.constant 0 : index
    %c0_2 = arith.constant 0 : index
    %1 = vector.load %arg1[%c0_1, %c0_2] : memref<11x2xf32, #tpu.memory_space<vmem>>, vector<11x2xf32>
    %2 = vector.extract_strided_slice %1 {offsets = [0, 0], sizes = [10, 2], strides = [1, 1]} : vector<11x2xf32> to vector<10x2xf32>
    %3 = vector.extract_strided_slice %1 {offsets = [10, 0], sizes = [1, 2], strides = [1, 1]} : vector<11x2xf32> to vector<1x2xf32>
    %cst = arith.constant dense<0.000000e+00> : vector<3x2xf32>
    %4 = tpu.matmul %0, %2, %cst {dimension_numbers = #tpu.dot_dimension_numbers<[1], [0], [0], [1], [0, 0, 1, 1], [], []>} : vector<3x10xf32>, vector<10x2xf32>, vector<3x2xf32> -> vector<3x2xf32>
    %5 = vector.broadcast %3 : vector<1x2xf32> to vector<3x2xf32>
    %6 = arith.addf %4, %5 : vector<3x2xf32>
    %7 = arith.negf %6 : vector<3x2xf32>
    %8 = math.exp %7 : vector<3x2xf32>
    %cst_3 = arith.constant 1.000000e+00 : f32
    %9 = vector.broadcast %cst_3 : f32 to vector<3x2xf32>
    %10 = arith.addf %9, %8 : vector<3x2xf32>
    %11 = arith.divf %9, %10 : vector<3x2xf32>
    %c0_4 = arith.constant 0 : index
    %c0_5 = arith.constant 0 : index
    %12 = vector.load %arg2[%c0_4, %c0_5] : memref<3x2xf32, #tpu.memory_space<vmem>>, vector<3x2xf32>
    tpu.vector_store %arg2[%c0_4, %c0_5], %11 {strides = array<i32>} : memref<3x2xf32, #tpu.memory_space<vmem>>, vector<3x2xf32>,
    return
  }
}

</mosaic_0001>

<bundles_post_ra>
// kernel: tpu_custom_call.1
= control target key start
LH: loop header
LB: loop body
LE: loop exit
PB: predicated region body
PF: predicated region fallthrough
CT: control target
= control target key end

     0   :  { %vm22_vm0 = vcmask 1041408   ;;  %v133_v0 = vmov 0.0|0.0   ;;  %vm134_vm1 = vmmov 1   ;;  %vm135_vm3 = vmmov 0   ;;  %s164_s1 = inlined_call_operand.vmem [shape: f32[11,2], index: 1, kind: input, shape index: {}]   ;;  %s165_s0 = inlined_call_operand.vmem [shape: f32[3,10], index: 0, kind: input, shape index: {}]   ;;  %s166_s2 = inlined_call_operand.vmem [shape: f32[3,2], index: 2, kind: output, shape index: {}]  }
   0x1   :  { %121 = vmatprep.subr.bf16.mxu0 %v133_v0  ;;  %v12_v1 = vld [vmem:[%s164_s1] sm:$0xff]  ;;  %v13_v2 = vld [vmem:[%s164_s1 + $0x8] sm:$0x7]  ;;  %vm123_vm2 = vmpackc.low %vm22_vm0, %vm134_vm1  ;;  %v136_v4 = vmov 0.0   ;;  %vm18_vm4 = vcmask 80896   ;;  %v14_v6 = vlaneseq  ;;  %vm102_vm5 = vcmask 10240  }
   0x2   :  { %v122_v3 = vpack.c.bf16 %v13_v2, %v12_v1  ;;  %118 = vmatprep.mubr.msk.f32.mxu0 %vm135_vm3, %v136_v4  ;;  %v11_v5 = vld [vmem:[%s165_s0] sm:$0x7] }
   0x3   :  { %v15_v7 = vshrl.u32 %v14_v6, 7 }
   0x4   :  { %124 = vmatpush3.bf16.msk.msra.mxu0 %vm123_vm2, %v122_v3 }
   0x5   :  { %v16_v8 = vsub.s32 2, %v15_v7 }
   0x7   :  { %119 = vmatmul.mubr.msk.f32.vlgmr.msra.gmra.mrb[0].mxu0 %vm18_vm4, %v11_v5  ;;  %v17_v9 = vrot.slane %v13_v2, %v16_v8 }
  0xda   :  { %v92_v10 = vpop.f32.mrb[0].mxu0 }
  0xdb   :  { %v93_v11 = vadd.f32 %v92_v10, %v17_v9  ;;  %v120_v12 = vpop.f32.mrb[1].mxu0 }
  0xdd   :  { %v110_v13 = vmul.f32 -1.442695, %v93_v11 }
  0xdf   :  { %129 = vpow2.f32 %v110_v13 }
  0xe9   :  { %v130_v14 = vpop.eup %129 }
  0xea   :  { %v99_v15 = vadd.f32 1.0, %v130_v14 }
  0xec   :  { %131 = vrcp.f32 %v99_v15 }
  0xf6   :  { %v132_v16 = vpop.eup %131 }
  0xf7   :  { %103 = vst.msk [vmem:[%s166_s2] sm:$0x7] %vm102_vm5, %v132_v16 }

</bundles_post_ra>
